<compile_context>
chip_gen: v5e
topology: v5e:2x2
jax: 0.10.0
libtpu: 0.0.40
codegen_flags: <defaults>
</compile_context>

<pallas_src>
import jax
import jax.numpy as jnp
from jax import lax
from jax.experimental import pallas as pl
from jax.experimental.pallas import tpu as pltpu

EPS = 1e-5


def rlinear_kernel(x_ref, wp_ref, wps_ref, bp_ref, wt_ref, bt_ref, o_ref):
    # x_ref block: [S, TN] f32 (time on sublanes, flat batch*channel on lanes)
    x = x_ref[...]

    # ---- RevIN statistics: single pass, var = E[x^2] - mean^2 (clamped) ----
    mean = jnp.mean(x, axis=0, keepdims=True)                  # [1, TN]
    meansq = jnp.mean(x * x, axis=0, keepdims=True)            # [1, TN]
    var = jnp.maximum(meansq - mean * mean, 0.0)
    inv_std = lax.rsqrt(var + EPS)                             # EUP op, no divide
    stdev = (var + EPS) * inv_std                              # == sqrt(var+EPS)

    # ---- pred_linear with RevIN-norm folded in ----
    # torch Linear weight is [P, S]; h = W @ ((x - mean) * inv_std) + b
    #                                 = (W @ x - rowsum(W) * mean) * inv_std + b
    wx = jnp.dot(wp_ref[...], x.astype(jnp.bfloat16),
                 preferred_element_type=jnp.float32)           # bf16 MXU, f32 acc
    h = (wx - wps_ref[...] * mean) * inv_std + bp_ref[...]     # [P, TN]

    # ---- TVI module: Linear(pred_len -> pred_len) + ReLU + residual ----
    t = jnp.dot(wt_ref[...], h.astype(jnp.bfloat16),
                preferred_element_type=jnp.float32)            # [P, TN]
    t = jnp.maximum(t + bt_ref[...], 0.0)   # ReLU (dropout = identity in eval)
    y = h + t

    # ---- RevIN "denorm": lane-dense store ----
    o_ref[...] = y * stdev + mean


def _vmem_plan():
    """(activation/output VMEM budget, compiler vmem limit) in bytes."""
    cap = 64 * 1024 * 1024                       # conservative default (v7x per-TC)
    try:
        info = pltpu.get_tpu_info()
        cap = int(getattr(info, "vmem_capacity_bytes", cap))
    except Exception:
        pass
    budget = min(cap // 3, 40 * 1024 * 1024)     # room for dbl-buffers + spills
    limit = min((cap * 3) // 4, 96 * 1024 * 1024)
    return budget, limit


def _choose_lane_tile(n_pad, s, p, budget_bytes):
    """Largest 128-multiple lane tile dividing n_pad that fits the VMEM budget."""
    # per-lane bytes: dbl-buffered f32 in (2*4*S) + dbl-buffered f32 out (2*4*P)
    #                 + bf16 copy of x (2*S) + ~4 f32 [P,TN] intermediates (16*P)
    per_lane = 8 * s + 8 * p + 2 * s + 16 * p
    for t in (2048, 1024, 512, 256, 128):
        if n_pad % t:
            continue
        if t * per_lane > budget_bytes:
            continue
        # keep >=4 grid steps (pipelining + megacore) before maxing the tile,
        # but never shrink below 512 just for step count
        if t > 512 and n_pad // t < 4 and n_pad // 128 >= 4:
            continue
        return t
    return 128


@jax.jit
def rlinear_forward(x_enc, w_pred, b_pred, w_tvi, b_tvi):
    """x_enc: [B, S, C] float32 -> [B, P, C] float32."""
    B, S, C = x_enc.shape
    P = w_pred.shape[0]
    N = B * C
    N_pad = ((N + 127) // 128) * 128

    budget, vmem_limit = _vmem_plan()
    TN = _choose_lane_tile(N_pad, S, P, budget)
    grid = (N_pad // TN,)

    # Lane-dense slab: xT[s, b*C + c] = x_enc[b, s, c] -> [S, N], zero-pad lanes
    xT = jnp.transpose(x_enc, (1, 0, 2)).reshape(S, N)
    if N_pad != N:
        xT = jnp.pad(xT, ((0, 0), (0, N_pad - N)))

    # Weights shipped as bf16 (halves DMA/VMEM, bf16 MXU path); the row-sum of
    # the pred weight (used by the folded normalization) stays f32.
    wp = w_pred.astype(jnp.bfloat16)                       # [P, S]
    wt = w_tvi.astype(jnp.bfloat16)                        # [P, P]
    wps = jnp.sum(w_pred, axis=1, keepdims=True)           # [P, 1] f32
    bp = b_pred.reshape(P, 1).astype(jnp.float32)
    bt = b_tvi.reshape(P, 1).astype(jnp.float32)

    out = pl.pallas_call(
        rlinear_kernel,
        out_shape=jax.ShapeDtypeStruct((P, N_pad), jnp.float32),
        grid_spec=pltpu.PrefetchScalarGridSpec(
            num_scalar_prefetch=0,
            grid=grid,
            in_specs=[
                # activations: tile only the lane (B*C) dimension
                pl.BlockSpec((S, TN), lambda n: (0, n)),
                # weights / biases: whole array resident in VMEM, no
                # double-buffering, no re-DMA across grid steps
                pl.BlockSpec(memory_space=pltpu.MemorySpace.VMEM),   # wp (bf16)
                pl.BlockSpec(memory_space=pltpu.MemorySpace.VMEM),   # rowsum(wp)
                pl.BlockSpec(memory_space=pltpu.MemorySpace.VMEM),   # bp
                pl.BlockSpec(memory_space=pltpu.MemorySpace.VMEM),   # wt (bf16)
                pl.BlockSpec(memory_space=pltpu.MemorySpace.VMEM),   # bt
            ],
            out_specs=pl.BlockSpec((P, TN), lambda n: (0, n)),
        ),
        compiler_params=pltpu.CompilerParams(
            # lane blocks are independent -> megacore-shardable
            dimension_semantics=("parallel",),
            vmem_limit_bytes=vmem_limit,
        ),
    )(xT, wp, wps, bp, wt, bt)

    # [P, N_pad] -> [P, N] -> [B, P, C]
    out = out[:, :N]
    return jnp.transpose(out.reshape(P, B, C), (1, 0, 2))


def reference_forward(x_enc, w_pred, b_pred, w_tvi, b_tvi):
    """Pure-JAX f32 reference mirroring the PyTorch forward."""
    mean = jnp.mean(x_enc, axis=1, keepdims=True)
    var = jnp.var(x_enc, axis=1, keepdims=True)           # unbiased=False
    stdev = jnp.sqrt(var + EPS)
    xn = (x_enc - mean) / stdev                           # [B, S, C]
    xp = jnp.transpose(xn, (0, 2, 1))                     # [B, C, S]
    h = jnp.einsum('bcs,ps->bcp', xp, w_pred) + b_pred    # [B, C, P]
    t = jnp.einsum('bcp,qp->bcq', h, w_tvi) + b_tvi
    t = jnp.maximum(t, 0.0)
    y = h + t
    y = jnp.transpose(y, (0, 2, 1))                       # [B, P, C]
    return y * stdev + mean


if __name__ == "__main__":
    # Small shapes consistent with the module: task 'long_term_forecast'
    B, SEQ_LEN, PRED_LEN, ENC_IN = 2, 16, 8, 4

    key = jax.random.PRNGKey(0)
    kx, kw1, kb1, kw2, kb2 = jax.random.split(key, 5)

    x_enc = jax.random.normal(kx, (B, SEQ_LEN, ENC_IN), dtype=jnp.float32)

    # Deterministic parameter init (uniform like torch Linear default bounds)
    bnd1 = 1.0 / (SEQ_LEN ** 0.5)
    w_pred = jax.random.uniform(kw1, (PRED_LEN, SEQ_LEN), jnp.float32, -bnd1, bnd1)
    b_pred = jax.random.uniform(kb1, (PRED_LEN,), jnp.float32, -bnd1, bnd1)
    bnd2 = 1.0 / (PRED_LEN ** 0.5)
    w_tvi = jax.random.uniform(kw2, (PRED_LEN, PRED_LEN), jnp.float32, -bnd2, bnd2)
    b_tvi = jax.random.uniform(kb2, (PRED_LEN,), jnp.float32, -bnd2, bnd2)

    out = rlinear_forward(x_enc, w_pred, b_pred, w_tvi, b_tvi)
    out = jax.block_until_ready(out)

    ref = reference_forward(x_enc, w_pred, b_pred, w_tvi, b_tvi)
    assert out.shape == (B, PRED_LEN, ENC_IN), out.shape
    # bf16 MXU operands => loosened tolerance (values are O(1) after RevIN)
    assert jnp.allclose(out, ref, atol=5e-2, rtol=5e-2), \
        float(jnp.max(jnp.abs(out - ref)))

    print("KERNEL_OK")
</pallas_src>

<mosaic_0001>
module attributes {stable_mosaic.version = 11 : i64} {
  func.func @rlinear_kernel(%arg0: i32, %arg1: memref<16x128xf32, #tpu.memory_space<vmem>>, %arg2: memref<8x16xbf16, #tpu.memory_space<vmem>>, %arg3: memref<8x1xf32, #tpu.memory_space<vmem>>, %arg4: memref<8x1xf32, #tpu.memory_space<vmem>>, %arg5: memref<8x8xbf16, #tpu.memory_space<vmem>>, %arg6: memref<8x1xf32, #tpu.memory_space<vmem>>, %arg7: memref<8x128xf32, #tpu.memory_space<vmem>>) attributes {dimension_semantics = [#tpu.dimension_semantics<parallel>], iteration_bounds = array<i64: 1>, scalar_prefetch = 0 : i64, scratch_operands = 0 : i64, tpu.core_type = #tpu.core_type<tc>, window_params = [{transform_indices = @transform_0, window_bounds = array<i64: 16, 128>}, {pipeline_mode = #tpu.pipeline_mode<synchronous>, transform_indices = @transform_1, window_bounds = array<i64: 8, 16>}, {pipeline_mode = #tpu.pipeline_mode<synchronous>, transform_indices = @transform_2, window_bounds = array<i64: 8, 1>}, {pipeline_mode = #tpu.pipeline_mode<synchronous>, transform_indices = @transform_3, window_bounds = array<i64: 8, 1>}, {pipeline_mode = #tpu.pipeline_mode<synchronous>, transform_indices = @transform_4, window_bounds = array<i64: 8, 8>}, {pipeline_mode = #tpu.pipeline_mode<synchronous>, transform_indices = @transform_5, window_bounds = array<i64: 8, 1>}, {transform_indices = @transform_6, window_bounds = array<i64: 8, 128>}]} {
    %c0 = arith.constant 0 : index
    %c0_0 = arith.constant 0 : index
    %0 = vector.load %arg1[%c0, %c0_0] : memref<16x128xf32, #tpu.memory_space<vmem>>, vector<16x128xf32>
    %cst = arith.constant dense<0.000000e+00> : vector<128xf32>
    %1 = vector.multi_reduction <add>, %0, %cst [0] : vector<16x128xf32> to vector<128xf32>
    %2 = vector.shape_cast %1 : vector<128xf32> to vector<1x128xf32>
    %cst_1 = arith.constant 1.600000e+01 : f32
    %3 = vector.broadcast %cst_1 : f32 to vector<1x128xf32>
    %4 = arith.divf %2, %3 : vector<1x128xf32>
    %5 = arith.mulf %0, %0 : vector<16x128xf32>
    %cst_2 = arith.constant dense<0.000000e+00> : vector<128xf32>
    %6 = vector.multi_reduction <add>, %5, %cst_2 [0] : vector<16x128xf32> to vector<128xf32>
    %7 = vector.shape_cast %6 : vector<128xf32> to vector<1x128xf32>
    %cst_3 = arith.constant 1.600000e+01 : f32
    %8 = vector.broadcast %cst_3 : f32 to vector<1x128xf32>
    %9 = arith.divf %7, %8 : vector<1x128xf32>
    %10 = arith.mulf %4, %4 : vector<1x128xf32>
    %11 = arith.subf %9, %10 : vector<1x128xf32>
    %cst_4 = arith.constant 0.000000e+00 : f32
    %12 = vector.broadcast %cst_4 : f32 to vector<1x128xf32>
    %13 = arith.maximumf %11, %12 : vector<1x128xf32>
    %cst_5 = arith.constant 9.99999974E-6 : f32
    %14 = vector.broadcast %cst_5 : f32 to vector<1x128xf32>
    %15 = arith.addf %13, %14 : vector<1x128xf32>
    %16 = math.rsqrt %15 : vector<1x128xf32>
    %cst_6 = arith.constant 9.99999974E-6 : f32
    %17 = vector.broadcast %cst_6 : f32 to vector<1x128xf32>
    %18 = arith.addf %13, %17 : vector<1x128xf32>
    %19 = arith.mulf %18, %16 : vector<1x128xf32>
    %c0_7 = arith.constant 0 : index
    %c0_8 = arith.constant 0 : index
    %20 = vector.load %arg2[%c0_7, %c0_8] : memref<8x16xbf16, #tpu.memory_space<vmem>>, vector<8x16xbf16>
    %21 = arith.truncf %0 : vector<16x128xf32> to vector<16x128xbf16>
    %cst_9 = arith.constant dense<0.000000e+00> : vector<8x128xf32>
    %22 = tpu.matmul %20, %21, %cst_9 {dimension_numbers = #tpu.dot_dimension_numbers<[1], [0], [0], [1], [0, 0, 1, 1], [], []>} : vector<8x16xbf16>, vector<16x128xbf16>, vector<8x128xf32> -> vector<8x128xf32>
    %c0_10 = arith.constant 0 : index
    %c0_11 = arith.constant 0 : index
    %23 = vector.load %arg3[%c0_10, %c0_11] : memref<8x1xf32, #tpu.memory_space<vmem>>, vector<8x1xf32>
    %24 = vector.broadcast %23 : vector<8x1xf32> to vector<8x128xf32>
    %25 = vector.broadcast %4 : vector<1x128xf32> to vector<8x128xf32>
    %26 = arith.mulf %24, %25 : vector<8x128xf32>
    %27 = arith.subf %22, %26 : vector<8x128xf32>
    %28 = vector.broadcast %16 : vector<1x128xf32> to vector<8x128xf32>
    %29 = arith.mulf %27, %28 : vector<8x128xf32>
    %c0_12 = arith.constant 0 : index
    %c0_13 = arith.constant 0 : index
    %30 = vector.load %arg4[%c0_12, %c0_13] : memref<8x1xf32, #tpu.memory_space<vmem>>, vector<8x1xf32>
    %31 = vector.broadcast %30 : vector<8x1xf32> to vector<8x128xf32>
    %32 = arith.addf %29, %31 : vector<8x128xf32>
    %c0_14 = arith.constant 0 : index
    %c0_15 = arith.constant 0 : index
    %33 = vector.load %arg5[%c0_14, %c0_15] : memref<8x8xbf16, #tpu.memory_space<vmem>>, vector<8x8xbf16>
    %34 = arith.truncf %32 : vector<8x128xf32> to vector<8x128xbf16>
    %cst_16 = arith.constant dense<0.000000e+00> : vector<8x128xf32>
    %35 = tpu.matmul %33, %34, %cst_16 {dimension_numbers = #tpu.dot_dimension_numbers<[1], [0], [0], [1], [0, 0, 1, 1], [], []>} : vector<8x8xbf16>, vector<8x128xbf16>, vector<8x128xf32> -> vector<8x128xf32>
    %c0_17 = arith.constant 0 : index
    %c0_18 = arith.constant 0 : index
    %36 = vector.load %arg6[%c0_17, %c0_18] : memref<8x1xf32, #tpu.memory_space<vmem>>, vector<8x1xf32>
    %37 = vector.broadcast %36 : vector<8x1xf32> to vector<8x128xf32>
    %38 = arith.addf %35, %37 : vector<8x128xf32>
    %cst_19 = arith.constant 0.000000e+00 : f32
    %39 = vector.broadcast %cst_19 : f32 to vector<8x128xf32>
    %40 = arith.maximumf %38, %39 : vector<8x128xf32>
    %41 = arith.addf %32, %40 : vector<8x128xf32>
    %42 = vector.broadcast %19 : vector<1x128xf32> to vector<8x128xf32>
    %43 = arith.mulf %41, %42 : vector<8x128xf32>
    %44 = vector.broadcast %4 : vector<1x128xf32> to vector<8x128xf32>
    %45 = arith.addf %43, %44 : vector<8x128xf32>
    %c0_20 = arith.constant 0 : index
    %c0_21 = arith.constant 0 : index
    %46 = vector.load %arg7[%c0_20, %c0_21] : memref<8x128xf32, #tpu.memory_space<vmem>>, vector<8x128xf32>
    tpu.vector_store %arg7[%c0_20, %c0_21], %45 {strides = array<i32>} : memref<8x128xf32, #tpu.memory_space<vmem>>, vector<8x128xf32>,
    return
  }
  func.func @transform_0(%arg0: i32) -> (i32, i32) {
    %c0_i32 = arith.constant 0 : i32
    %c0_i32_0 = arith.constant 0 : i32
    return %c0_i32, %arg0 : i32, i32
  }
  func.func @transform_1(%arg0: i32) -> (i32, i32) {
    %c0_i32 = arith.constant 0 : i32
    %c0_i32_0 = arith.constant 0 : i32
    %c0_i32_1 = arith.constant 0 : i32
    return %c0_i32, %c0_i32_0 : i32, i32
  }
  func.func @transform_2(%arg0: i32) -> (i32, i32) {
    %c0_i32 = arith.constant 0 : i32
    %c0_i32_0 = arith.constant 0 : i32
    %c0_i32_1 = arith.constant 0 : i32
    return %c0_i32, %c0_i32_0 : i32, i32
  }
  func.func @transform_3(%arg0: i32) -> (i32, i32) {
    %c0_i32 = arith.constant 0 : i32
    %c0_i32_0 = arith.constant 0 : i32
    %c0_i32_1 = arith.constant 0 : i32
    return %c0_i32, %c0_i32_0 : i32, i32
  }
  func.func @transform_4(%arg0: i32) -> (i32, i32) {
    %c0_i32 = arith.constant 0 : i32
    %c0_i32_0 = arith.constant 0 : i32
    %c0_i32_1 = arith.constant 0 : i32
    return %c0_i32, %c0_i32_0 : i32, i32
  }
  func.func @transform_5(%arg0: i32) -> (i32, i32) {
    %c0_i32 = arith.constant 0 : i32
    %c0_i32_0 = arith.constant 0 : i32
    %c0_i32_1 = arith.constant 0 : i32
    return %c0_i32, %c0_i32_0 : i32, i32
  }
  func.func @transform_6(%arg0: i32) -> (i32, i32) {
    %c0_i32 = arith.constant 0 : i32
    %c0_i32_0 = arith.constant 0 : i32
    return %c0_i32, %arg0 : i32, i32
  }
}

</mosaic_0001>

<bundles_post_ra>
// kernel: rlinear_forward.1
= control target key start
LH: loop header
LB: loop body
LE: loop exit
PB: predicated region body
PF: predicated region fallthrough
CT: control target
= control target key end

     0   :  { %v149_v2 = vmov 0   ;;  %vm68_vm0 = vcmask 130048   ;;  %v150_v11 = vmov 16.0   ;;  %vm113_vm5 = vcmask 1043456   ;;  %s210_s0 = inlined_call_operand.vmem [shape: f32[16,128], index: 0, kind: input, shape index: {}]   ;;  %s211_s2 = inlined_call_operand.vmem [shape: f32[8,1], index: 2, kind: input, shape index: {}]   ;;  %s212_s1 = inlined_call_operand.vmem [shape: bf16[8,16], index: 1, kind: input, shape index: {}]   ;;  %s213_s3 = inlined_call_operand.vmem [shape: f32[8,1], index: 3, kind: input, shape index: {}]   ;;  %s214_s5 = inlined_call_operand.vmem [shape: f32[8,1], index: 5, kind: input, shape index: {}]   ;;  %s215_s4 = inlined_call_operand.vmem [shape: bf16[8,8], index: 4, kind: input, shape index: {}]   ;;  %s216_s6 = inlined_call_operand.vmem [shape: f32[8,128], index: 6, kind: output, shape index: {}]  }
   0x1   :  { %v24_v0 = vld [vmem:[%s210_s0] sm:$0xff]  ;;  %v25_v1 = vld [vmem:[%s210_s0 + $0x8] sm:$0xff]  ;;  %143 = vset.pattern.permute.xlu0 %v149_v2  ;;  %144 = vset.pattern.permute.xlu1 %v149_v2  ;;  %145 = vrcp.f32 %v150_v11  ;;  %vm109_vm6 = vcmask 64512  }
   0x2   :  { %v85_v3 = vld [vmem:[%s211_s2] sm:$0xff]  ;;  %v26_v4 = vadd.f32 %v25_v1, %v24_v0  ;;  %v41_v5 = vmul.f32 %v24_v0, %v24_v0  ;;  %v42_v6 = vmul.f32 %v25_v1, %v25_v1  ;;  %v67_v7 = vpack.c.bf16 %v25_v1, %v24_v0 }
   0x3   :  { %88 = vperm.xlu0 %143, %v85_v3   ;;  %v66_v9 = vld [vmem:[%s212_s1] sm:$0xf] }
   0x4   :  { %v43_v8 = vadd.f32 %v42_v6, %v41_v5  ;;  %79 = vmatpush.bf16.msra.mxu0 %v67_v7  ;;  %v94_v10 = vld [vmem:[%s213_s3] sm:$0xff]  ;;  %v27_v13 = vrot.slane %v26_v4, 4 }
   0x5   :  { %v103_v44 = vld [vmem:[%s214_s5] sm:$0xff] }
   0x6   :  { %v44_v15 = vrot.slane %v43_v8, 4  ;;  %v28_v16 = vadd.f32 %v27_v13, %v26_v4  ;;  %106 = vperm.xlu1 %144, %v103_v44   ;;  %v101_v55 = vld [vmem:[%s215_s4] sm:$0xf] }
   0x7   :  { %139 = vmatmul.msk.bf16.vlgmr.msra.gmra.mxu0 %vm68_vm0, %v66_v9  ;;  %v146_v12 = vpop.eup %145 }
   0x8   :  { %v34_v14 = vmul.f32 16.0, %v146_v12  ;;  %v45_v18 = vadd.f32 %v44_v15, %v43_v8  ;;  %v29_v19 = vrot.slane %v28_v16, 2  ;;  %vm38_vm1 = vweird.f32 %v146_v12 }
   0xa   :  { %v35_v17 = vsub.f32 1.0, %v34_v14  ;;  %v46_v21 = vrot.slane %v45_v18, 2  ;;  %v30_v22 = vadd.f32 %v29_v19, %v28_v16 }
   0xb   :  { %97 = vperm.xlu0 %143, %v94_v10  }
   0xc   :  { %v36_v20 = vmul.f32 %v146_v12, %v35_v17  ;;  %v47_v24 = vadd.f32 %v46_v21, %v45_v18  ;;  %v31_v25 = vrot.slane %v30_v22, 1 }
   0xe   :  { %v37_v23 = vadd.f32 %v146_v12, %v36_v20  ;;  %v32_v27 = vadd.f32 %v31_v25, %v30_v22  ;;  %v48_v28 = vrot.slane %v47_v24, 1 }
  0x10   :  { %v39_v26 = vsel %vm38_vm1, %v146_v12, %v37_v23  ;;  %v49_v30 = vadd.f32 %v48_v28, %v47_v24 }
  0x11   :  { %v40_v29 = vmul.f32 %v39_v26, %v32_v27 }
  0x12   :  { %v50_v31 = vmul.f32 %v49_v30, %v39_v26 }
  0x13   :  { %v51_v32 = vmul.f32 %v40_v29, %v40_v29 }
  0x15   :  { %v52_v33 = vsub.f32 %v50_v31, %v51_v32 }
  0x17   :  { %v53_v34 = vmax.f32 %v52_v33, 0.0 }
  0x19   :  { %v54_v35 = vadd.f32 1e-05, %v53_v34 }
  0x1b   :  { %147 = vrsqrt.f32 %v54_v35  ;;  %vm61_vm2 = vweird.f32 %v54_v35 }
  0x21   :  { %v148_v36 = vpop.eup %147 }
  0x22   :  { %v56_v37 = vmul.f32 %v148_v36, %v54_v35  ;;  %vm62_vm3 = vweird.f32 %v148_v36 }
  0x23   :  { %vm63_vm4 = vmor %vm61_vm2, %vm62_vm3 }
  0x24   :  { %v57_v38 = vmul.f32 %v148_v36, %v56_v37 }
  0x26   :  { %v58_v39 = vmul.f32 0.5, %v57_v38 }
  0x28   :  { %v59_v40 = vsub.f32 1.5, %v58_v39 }
  0x2a   :  { %v60_v41 = vmul.f32 %v148_v36, %v59_v40 }
  0x2c   :  { %v64_v42 = vsel %vm63_vm4, %v148_v36, %v60_v41 }
  0x2d   :  { %v65_v43 = vmul.f32 %v64_v42, %v54_v35 }
  0x75   :  { %v89_v45 = vpop.permute.xlu0 %88 }
  0x76   :  { %v91_v46 = vmul.f32 %v89_v45, %v40_v29 }
  0x78   :  { %v107_v56 = vpop.permute.xlu1 %106 }
  0x7d   :  { %v98_v50 = vpop.permute.xlu0 %97 }
  0x84   :  { %v81_v47 = vpop.f32.mrf.mxu0 }
  0x85   :  { %v92_v48 = vsub.f32 %v81_v47, %v91_v46 }
  0x87   :  { %v93_v49 = vmul.f32 %v92_v48, %v64_v42 }
  0x89   :  { %v100_v51 = vadd.f32 %v98_v50, %v93_v49 }
  0x8b   :  { %v102_v52 = vpack.c.bf16 %v100_v51, %v100_v51 }
  0x8c   :  { %v83_v53 = vpop.f32.mrf.mxu0 }
  0x8d   :  { %v115_v54 = vsel %vm113_vm5, %v102_v52, 0 }
  0x8e   :  { %124 = vmatpush.bf16.msra.mxu1 %v115_v54 }
  0x91   :  { %140 = vmatmul.msk.bf16.vlgmr.msra.gmra.mxu1 %vm109_vm6, %v101_v55 }
 0x10e   :  { %v126_v57 = vpop.f32.mrf.mxu1 }
 0x10f   :  { %v127_v58 = vadd.f32 %v126_v57, %v107_v56 }
 0x111   :  { %v130_v59 = vmax.f32 %v127_v58, 0.0 }
 0x113   :  { %v131_v60 = vadd.f32 %v130_v59, %v100_v51 }
 0x115   :  { %v132_v61 = vmul.f32 %v131_v60, %v65_v43 }
 0x116   :  { %v128_v62 = vpop.f32.mrf.mxu1 }
 0x117   :  { %v133_v63 = vadd.f32 %v132_v61, %v40_v29 }
 0x119   :  { %134 = vst [vmem:[%s216_s6] sm:$0xff] %v133_v63 }

</bundles_post_ra>
